<compile_context>
chip_gen: v6e
topology: v6e:2x2x1
jax: 0.10.0
libtpu: 0.0.40
codegen_flags: <defaults>
</compile_context>

<pallas_src>
import functools
import math

import jax
import jax.numpy as jnp
from jax import lax
from jax.experimental import pallas as pl
from jax.experimental.pallas import tpu as pltpu

_EPS = 1e-5                # nn.BatchNorm1d default eps
_TARGET_TILE_ROWS = 1024   # measured sweet spot for row tiles is >= 512 rows


def _round_up(x, m):
    return ((x + m - 1) // m) * m


@functools.lru_cache(maxsize=None)
def _vmem_limit_bytes():
    """~75% of this generation's physical VMEM (v5e/v6e ~96 MiB, v7x ~48 MiB)."""
    cap = 128 * 1024 * 1024
    try:
        cap = int(getattr(pltpu.get_tpu_info(), "vmem_capacity_bytes", cap))
    except Exception:
        pass
    return max(32 * 1024 * 1024, (cap * 3) // 4)


def _compiler_params(dims):
    return pltpu.CompilerParams(dimension_semantics=dims,
                                vmem_limit_bytes=_vmem_limit_bytes())


# --------------------------------------------------------------------------- #
# Kernel helpers
# --------------------------------------------------------------------------- #
def _conv3(h, w_ref, lp):
    """3-tap 'same' conv along rows (one sequence per lp-row block).

    h      : (tr, C) f32 activations, tr a multiple of lp (whole sequences)
    w_ref  : (3, C, Cout) bf16 tap-stacked conv weights
    returns: (tr, Cout) f32 (three accumulating MXU dots, f32 accumulation).
    Conv1d bias omitted: it cancels exactly under training-mode BatchNorm.
    """
    tr = h.shape[0]
    row = lax.broadcasted_iota(jnp.int32, (tr, 1), 0)
    zero = jnp.zeros_like(h)
    # Shifted taps via XLU roll; the rows that would wrap across a sequence
    # boundary are exactly the zero-padding rows of the 'same' convolution.
    hm1 = jnp.where(row % lp == 0, zero, pltpu.roll(h, 1, 0))            # h[l-1]
    hp1 = jnp.where(row % lp == lp - 1, zero, pltpu.roll(h, tr - 1, 0))  # h[l+1]
    y = jnp.dot(hm1.astype(jnp.bfloat16), w_ref[0], preferred_element_type=jnp.float32)
    y = y + jnp.dot(h.astype(jnp.bfloat16), w_ref[1], preferred_element_type=jnp.float32)
    y = y + jnp.dot(hp1.astype(jnp.bfloat16), w_ref[2], preferred_element_type=jnp.float32)
    return y


def _accumulate_stats(stats_ref, y):
    """Accumulate per-channel [sum; sum-of-squares] into a revisited output."""
    part = jnp.concatenate([jnp.sum(y, axis=0, keepdims=True),
                            jnp.sum(y * y, axis=0, keepdims=True)], axis=0)
    i = pl.program_id(0)

    @pl.when(i == 0)
    def _():
        stats_ref[...] = part

    @pl.when(i != 0)
    def _():
        stats_ref[...] = stats_ref[...] + part


# --------------------------------------------------------------------------- #
# Pass kernels
# --------------------------------------------------------------------------- #
def _conv1_stats_kernel(x_ref, w_ref, y_ref, stats_ref, *, lp):
    """Pass 1: conv1 over pooled rows; emit pre-BN activations + BN1 sums."""
    x = x_ref[...].astype(jnp.float32)              # (tr, Cin)
    y = _conv3(x, w_ref, lp)                        # (tr, Cout) f32
    y_ref[...] = y.astype(y_ref.dtype)
    # Zero batch-padding rows produce exactly-zero y (linear, no bias), so they
    # contribute nothing to the sums; no masking needed here.
    _accumulate_stats(stats_ref, y)


def _bn_act_conv2_stats_kernel(y1_ref, s1_ref, b1_ref, a1_ref, w_ref,
                               y2_ref, stats_ref, *, lp, valid_rows):
    """Pass 2: BN1 + PReLU (f32) -> conv2 -> pre-BN activations + BN2 sums."""
    z = y1_ref[...].astype(jnp.float32) * s1_ref[...] + b1_ref[...]
    h = jnp.where(z >= 0, z, a1_ref[...] * z)       # PReLU, f32
    y = _conv3(h, w_ref, lp)                        # (tr, Cout) f32
    y2_ref[...] = y.astype(y2_ref.dtype)
    # Batch-padding rows are no longer zero after BN's shift -> mask them out
    # of the BN2 statistics (their y2 values are never read back).
    tr = y.shape[0]
    row = lax.broadcasted_iota(jnp.int32, (tr, 1), 0) + pl.program_id(0) * tr
    _accumulate_stats(stats_ref, jnp.where(row < valid_rows, y, 0.0))


def _bn_act_kernel(y2_ref, s2_ref, b2_ref, a2_ref, o_ref):
    """Pass 3: BN2 + PReLU, compact f32 store (row-parallel across cores)."""
    z = y2_ref[...].astype(jnp.float32) * s2_ref[...] + b2_ref[...]
    o_ref[...] = jnp.where(z >= 0, z, a2_ref[...] * z)


# --------------------------------------------------------------------------- #
# Wrapper
# --------------------------------------------------------------------------- #
def _pack_conv_w(w):
    """torch Conv1d weight (Cout, Cin, 3) -> tap-stacked (3, Cin, Cout) bf16."""
    return jnp.transpose(w, (2, 1, 0)).astype(jnp.bfloat16)


def _bn_prelu_vectors(stats, gamma, beta, alpha, count):
    """Fold training-mode BN stats + affine into per-channel scale/shift/slope."""
    cout = gamma.shape[0]
    mean = stats[0] / count
    var = jnp.maximum(stats[1] / count - mean * mean, 0.0)   # biased batch var
    scale = gamma.astype(jnp.float32) * lax.rsqrt(var + _EPS)
    shift = beta.astype(jnp.float32) - mean * scale
    slope = jnp.broadcast_to(alpha.astype(jnp.float32).reshape(1, -1), (1, cout))
    return scale.reshape(1, cout), shift.reshape(1, cout), slope


def _choose_tiles(n, lp):
    """Whole pooled sequences per tile (k=3 conv needs no halo); ~1024 rows."""
    mult = 8 // math.gcd(max(lp, 1), 8)              # keep tile rows % 8 == 0
    nb = max(1, min(n, _TARGET_TILE_ROWS // max(lp, 1)))
    nb = _round_up(nb, mult)
    n_pad = _round_up(n, nb)
    return nb, n_pad


@jax.jit
def down_forward(x_ncl, params):
    """Down.forward: x (N, Cin, L) -> (N, Cout, L//2), PyTorch NCL convention."""
    n, cin, length = x_ncl.shape
    lp = length // 2                                 # MaxPool1d(2) floors odd L
    cout = params["conv1_w"].shape[0]
    nb, n_pad = _choose_tiles(n, lp)
    tr = nb * lp                                     # rows per grid step
    grid = (n_pad // nb,)
    rows = n_pad * lp
    count = float(n * lp)                            # true BN row count

    # Layout plumbing (one fused XLA pass over the small-channel input):
    # MaxPool1d(2), NCL -> row-major channels-last, bf16, zero-pad the batch to
    # a tile multiple (padded sequences contribute exactly zero to BN1 sums).
    x = x_ncl[:, :, :2 * lp].astype(jnp.float32)
    x = jnp.max(x.reshape(n, cin, lp, 2), axis=-1)              # (N, Cin, Lp)
    x = jnp.transpose(x, (0, 2, 1)).astype(jnp.bfloat16)        # (N, Lp, Cin)
    x = jnp.pad(x, ((0, n_pad - n), (0, 0), (0, 0))).reshape(rows, cin)

    w1 = _pack_conv_w(params["conv1_w"])             # (3, Cin,  Cout) bf16
    w2 = _pack_conv_w(params["conv2_w"])             # (3, Cout, Cout) bf16

    def row_spec(c):
        return pl.BlockSpec((tr, c), lambda i: (i, 0))

    def full_spec(shape):
        return pl.BlockSpec(shape, lambda i: tuple(0 for _ in shape))

    stats_spec = pl.BlockSpec((2, cout), lambda i: (0, 0))      # revisited acc

    # ---- Pass 1: conv1 + BN1 sum/sumsq ------------------------------------ #
    y1, stats1 = pl.pallas_call(
        functools.partial(_conv1_stats_kernel, lp=lp),
        out_shape=(jax.ShapeDtypeStruct((rows, cout), jnp.bfloat16),
                   jax.ShapeDtypeStruct((2, cout), jnp.float32)),
        grid_spec=pltpu.PrefetchScalarGridSpec(
            num_scalar_prefetch=0, grid=grid,
            in_specs=[row_spec(cin), full_spec((3, cin, cout))],
            out_specs=(row_spec(cout), stats_spec)),
        compiler_params=_compiler_params(("arbitrary",)),
    )(x, w1)

    s1, b1, a1 = _bn_prelu_vectors(stats1, params["bn1_g"], params["bn1_b"],
                                   params["prelu1_a"], count)

    # ---- Pass 2: BN1 + PReLU + conv2 + BN2 sum/sumsq ----------------------- #
    y2, stats2 = pl.pallas_call(
        functools.partial(_bn_act_conv2_stats_kernel, lp=lp, valid_rows=n * lp),
        out_shape=(jax.ShapeDtypeStruct((rows, cout), jnp.bfloat16),
                   jax.ShapeDtypeStruct((2, cout), jnp.float32)),
        grid_spec=pltpu.PrefetchScalarGridSpec(
            num_scalar_prefetch=0, grid=grid,
            in_specs=[row_spec(cout), full_spec((1, cout)), full_spec((1, cout)),
                      full_spec((1, cout)), full_spec((3, cout, cout))],
            out_specs=(row_spec(cout), stats_spec)),
        compiler_params=_compiler_params(("arbitrary",)),
    )(y1, s1, b1, a1, w2)

    s2, b2, a2 = _bn_prelu_vectors(stats2, params["bn2_g"], params["bn2_b"],
                                   params["prelu2_a"], count)

    # ---- Pass 3: BN2 + PReLU (row-parallel -> shards across v7x's 2 TCs) --- #
    out2d = pl.pallas_call(
        _bn_act_kernel,
        out_shape=jax.ShapeDtypeStruct((rows, cout), jnp.float32),
        grid_spec=pltpu.PrefetchScalarGridSpec(
            num_scalar_prefetch=0, grid=grid,
            in_specs=[row_spec(cout), full_spec((1, cout)), full_spec((1, cout)),
                      full_spec((1, cout))],
            out_specs=row_spec(cout)),
        compiler_params=_compiler_params(("parallel",)),
    )(y2, s2, b2, a2)

    out = out2d.reshape(n_pad, lp, cout)[:n]
    # TODO(synk): fold this channels-last -> NCL transpose into pass 3's store
    # if the consumer cannot take channels-last directly.
    return jnp.transpose(out, (0, 2, 1))             # (N, Cout, Lp)


# --------------------------------------------------------------------------- #
# Parameters & pure-JAX reference
# --------------------------------------------------------------------------- #
def init_params(key, cin, cout):
    """Parameters in PyTorch layouts, deterministically initialised."""
    ks = jax.random.split(key, 6)

    def conv_w(k, co, ci):
        return jax.random.normal(k, (co, ci, 3), jnp.float32) * 0.2

    return {
        "conv1_w": conv_w(ks[0], cout, cin),
        "conv1_b": jax.random.normal(ks[1], (cout,), jnp.float32) * 0.1,
        "bn1_g": 1.0 + 0.1 * jax.random.normal(ks[2], (cout,), jnp.float32),
        "bn1_b": 0.1 * jax.random.normal(ks[3], (cout,), jnp.float32),
        "prelu1_a": jnp.full((1,), 0.25, jnp.float32),      # nn.PReLU() default
        "conv2_w": conv_w(ks[4], cout, cout),
        "conv2_b": jax.random.normal(ks[5], (cout,), jnp.float32) * 0.1,
        "bn2_g": jnp.ones((cout,), jnp.float32),
        "bn2_b": jnp.zeros((cout,), jnp.float32),
        "prelu2_a": jnp.full((1,), 0.25, jnp.float32),
    }


def down_reference(x_ncl, p):
    """Pure-JAX f32 reference of the same forward pass (sanity check)."""
    n, c, length = x_ncl.shape
    lp = length // 2
    x = x_ncl[:, :, :2 * lp].astype(jnp.float32)
    x = jnp.max(x.reshape(n, c, lp, 2), axis=-1)            # MaxPool1d(2)
    x = jnp.transpose(x, (0, 2, 1))                         # (N, Lp, C)

    def conv1x3(h, w, b):                                   # w (Co, Ci, 3), b (Co,)
        wk = jnp.transpose(w, (2, 1, 0))
        hp = jnp.pad(h, ((0, 0), (1, 1), (0, 0)))
        return hp[:, :-2] @ wk[0] + hp[:, 1:-1] @ wk[1] + hp[:, 2:] @ wk[2] + b

    def bn(h, g, b):
        m = jnp.mean(h, axis=(0, 1), keepdims=True)
        v = jnp.mean((h - m) ** 2, axis=(0, 1), keepdims=True)
        return (h - m) / jnp.sqrt(v + _EPS) * g + b

    def prelu(h, a):
        return jnp.where(h >= 0, h, a * h)

    h = prelu(bn(conv1x3(x, p["conv1_w"], p["conv1_b"]), p["bn1_g"], p["bn1_b"]),
              p["prelu1_a"])
    h = prelu(bn(conv1x3(h, p["conv2_w"], p["conv2_b"]), p["bn2_g"], p["bn2_b"]),
              p["prelu2_a"])
    return jnp.transpose(h, (0, 2, 1))


if __name__ == "__main__":
    key = jax.random.PRNGKey(0)
    k_x, k_p = jax.random.split(key)

    N, C_IN, C_OUT, L = 2, 4, 8, 16
    x = jax.random.normal(k_x, (N, C_IN, L), jnp.float32)   # PyTorch NCL input
    params = init_params(k_p, C_IN, C_OUT)

    out = jax.block_until_ready(down_forward(x, params))

    assert out.shape == (N, C_OUT, L // 2), out.shape
    assert bool(jnp.all(jnp.isfinite(out)))

    ref = down_reference(x, params)
    max_err = float(jnp.max(jnp.abs(out - ref)))
    # Tolerance reflects the bf16 MXU path and bf16 inter-pass activations.
    assert jnp.allclose(out, ref, atol=3e-2, rtol=3e-2), max_err

    print("KERNEL_OK")
</pallas_src>

<mosaic_0001>
module attributes {stable_mosaic.version = 11 : i64} {
  func.func @_conv1_stats_kernel(%arg0: i32, %arg1: memref<16x4xbf16, #tpu.memory_space<vmem>>, %arg2: memref<3x4x8xbf16, #tpu.memory_space<vmem>>, %arg3: memref<16x8xbf16, #tpu.memory_space<vmem>>, %arg4: memref<2x8xf32, #tpu.memory_space<vmem>>) attributes {dimension_semantics = [#tpu.dimension_semantics<arbitrary>], iteration_bounds = array<i64: 1>, scalar_prefetch = 0 : i64, scratch_operands = 0 : i64, tpu.core_type = #tpu.core_type<tc>, window_params = [{transform_indices = @transform_0, window_bounds = array<i64: 16, 4>}, {pipeline_mode = #tpu.pipeline_mode<synchronous>, transform_indices = @transform_1, window_bounds = array<i64: 3, 4, 8>}, {transform_indices = @transform_2, window_bounds = array<i64: 16, 8>}, {pipeline_mode = #tpu.pipeline_mode<synchronous>, transform_indices = @transform_3, window_bounds = array<i64: 2, 8>}]} {
    %c0 = arith.constant 0 : index
    %c0_0 = arith.constant 0 : index
    %0 = vector.load %arg1[%c0, %c0_0] : memref<16x4xbf16, #tpu.memory_space<vmem>>, vector<16x4xbf16>
    %1 = arith.extf %0 : vector<16x4xbf16> to vector<16x4xf32>
    %2 = tpu.iota {dimensions = array<i32: 0>} : vector<16x1xi32>
    %cst = arith.constant 0.000000e+00 : f32
    %3 = vector.broadcast %cst : f32 to vector<16x4xf32>
    %c8_i32 = arith.constant 8 : i32
    %c0_i32 = arith.constant 0 : i32
    %4 = arith.cmpi eq, %c8_i32, %c0_i32 : i32
    %c1_i32 = arith.constant 1 : i32
    %5 = arith.select %4, %c1_i32, %c8_i32 : i32
    %6 = vector.broadcast %5 : i32 to vector<16x1xi32>
    %7 = arith.remsi %2, %6 : vector<16x1xi32>
    %c0_i32_1 = arith.constant 0 : i32
    %8 = vector.broadcast %c0_i32_1 : i32 to vector<16x1xi32>
    %9 = arith.cmpi ne, %7, %8 : vector<16x1xi32>
    %c0_i32_2 = arith.constant 0 : i32
    %10 = vector.broadcast %c0_i32_2 : i32 to vector<16x1xi32>
    %11 = arith.cmpi slt, %7, %10 : vector<16x1xi32>
    %c0_i32_3 = arith.constant 0 : i32
    %12 = arith.cmpi slt, %5, %c0_i32_3 : i32
    %13 = vector.broadcast %12 : i1 to vector<16x1xi1>
    %14 = vector.broadcast %13 : vector<16x1xi1> to vector<16x1xi1>
    %15 = arith.xori %11, %14 : vector<16x1xi1>
    %16 = arith.andi %15, %9 : vector<16x1xi1>
    %17 = vector.broadcast %5 : i32 to vector<16x1xi32>
    %18 = arith.addi %7, %17 : vector<16x1xi32>
    %19 = arith.select %16, %18, %7 : vector<16x1xi1>, vector<16x1xi32>
    %c0_i32_4 = arith.constant 0 : i32
    %20 = vector.broadcast %c0_i32_4 : i32 to vector<16x1xi32>
    %21 = arith.cmpi eq, %19, %20 : vector<16x1xi32>
    %c1_i32_5 = arith.constant 1 : i32
    %22 = tpu.dynamic_rotate %1 by %c1_i32_5 dim 0 : vector<16x4xf32>, i32 -> vector<16x4xf32>
    %23 = vector.shape_cast %21 : vector<16x1xi1> to vector<16x1xi1>
    %24 = vector.broadcast %23 : vector<16x1xi1> to vector<16x4xi1>
    %25 = arith.select %24, %3, %22 : vector<16x4xi1>, vector<16x4xf32>
    %c8_i32_6 = arith.constant 8 : i32
    %c0_i32_7 = arith.constant 0 : i32
    %26 = arith.cmpi eq, %c8_i32_6, %c0_i32_7 : i32
    %c1_i32_8 = arith.constant 1 : i32
    %27 = arith.select %26, %c1_i32_8, %c8_i32_6 : i32
    %28 = vector.broadcast %27 : i32 to vector<16x1xi32>
    %29 = arith.remsi %2, %28 : vector<16x1xi32>
    %c0_i32_9 = arith.constant 0 : i32
    %30 = vector.broadcast %c0_i32_9 : i32 to vector<16x1xi32>
    %31 = arith.cmpi ne, %29, %30 : vector<16x1xi32>
    %c0_i32_10 = arith.constant 0 : i32
    %32 = vector.broadcast %c0_i32_10 : i32 to vector<16x1xi32>
    %33 = arith.cmpi slt, %29, %32 : vector<16x1xi32>
    %c0_i32_11 = arith.constant 0 : i32
    %34 = arith.cmpi slt, %27, %c0_i32_11 : i32
    %35 = vector.broadcast %34 : i1 to vector<16x1xi1>
    %36 = vector.broadcast %35 : vector<16x1xi1> to vector<16x1xi1>
    %37 = arith.xori %33, %36 : vector<16x1xi1>
    %38 = arith.andi %37, %31 : vector<16x1xi1>
    %39 = vector.broadcast %27 : i32 to vector<16x1xi32>
    %40 = arith.addi %29, %39 : vector<16x1xi32>
    %41 = arith.select %38, %40, %29 : vector<16x1xi1>, vector<16x1xi32>
    %c7_i32 = arith.constant 7 : i32
    %42 = vector.broadcast %c7_i32 : i32 to vector<16x1xi32>
    %43 = arith.cmpi eq, %41, %42 : vector<16x1xi32>
    %c15_i32 = arith.constant 15 : i32
    %44 = tpu.dynamic_rotate %1 by %c15_i32 dim 0 : vector<16x4xf32>, i32 -> vector<16x4xf32>
    %45 = vector.shape_cast %43 : vector<16x1xi1> to vector<16x1xi1>
    %46 = vector.broadcast %45 : vector<16x1xi1> to vector<16x4xi1>
    %47 = arith.select %46, %3, %44 : vector<16x4xi1>, vector<16x4xf32>
    %48 = arith.truncf %25 : vector<16x4xf32> to vector<16x4xbf16>
    %c0_12 = arith.constant 0 : index
    %c0_13 = arith.constant 0 : index
    %c0_14 = arith.constant 0 : index
    %49 = vector.load %arg2[%c0_12, %c0_13, %c0_14] : memref<3x4x8xbf16, #tpu.memory_space<vmem>>, vector<1x4x8xbf16>
    %50 = vector.shape_cast %49 : vector<1x4x8xbf16> to vector<4x8xbf16>
    %cst_15 = arith.constant dense<0.000000e+00> : vector<16x8xf32>
    %51 = tpu.matmul %48, %50, %cst_15 {dimension_numbers = #tpu.dot_dimension_numbers<[1], [0], [0], [1], [0, 0, 1, 1], [], []>} : vector<16x4xbf16>, vector<4x8xbf16>, vector<16x8xf32> -> vector<16x8xf32>
    %52 = arith.truncf %1 : vector<16x4xf32> to vector<16x4xbf16>
    %c1 = arith.constant 1 : index
    %c0_16 = arith.constant 0 : index
    %c0_17 = arith.constant 0 : index
    %53 = vector.load %arg2[%c1, %c0_16, %c0_17] : memref<3x4x8xbf16, #tpu.memory_space<vmem>>, vector<1x4x8xbf16>
    %54 = vector.shape_cast %53 : vector<1x4x8xbf16> to vector<4x8xbf16>
    %cst_18 = arith.constant dense<0.000000e+00> : vector<16x8xf32>
    %55 = tpu.matmul %52, %54, %cst_18 {dimension_numbers = #tpu.dot_dimension_numbers<[1], [0], [0], [1], [0, 0, 1, 1], [], []>} : vector<16x4xbf16>, vector<4x8xbf16>, vector<16x8xf32> -> vector<16x8xf32>
    %56 = arith.addf %51, %55 : vector<16x8xf32>
    %57 = arith.truncf %47 : vector<16x4xf32> to vector<16x4xbf16>
    %c2 = arith.constant 2 : index
    %c0_19 = arith.constant 0 : index
    %c0_20 = arith.constant 0 : index
    %58 = vector.load %arg2[%c2, %c0_19, %c0_20] : memref<3x4x8xbf16, #tpu.memory_space<vmem>>, vector<1x4x8xbf16>
    %59 = vector.shape_cast %58 : vector<1x4x8xbf16> to vector<4x8xbf16>
    %cst_21 = arith.constant dense<0.000000e+00> : vector<16x8xf32>
    %60 = tpu.matmul %57, %59, %cst_21 {dimension_numbers = #tpu.dot_dimension_numbers<[1], [0], [0], [1], [0, 0, 1, 1], [], []>} : vector<16x4xbf16>, vector<4x8xbf16>, vector<16x8xf32> -> vector<16x8xf32>
    %61 = arith.addf %56, %60 : vector<16x8xf32>
    %62 = arith.truncf %61 : vector<16x8xf32> to vector<16x8xbf16>
    %c0_22 = arith.constant 0 : index
    %c0_23 = arith.constant 0 : index
    %63 = vector.load %arg3[%c0_22, %c0_23] : memref<16x8xbf16, #tpu.memory_space<vmem>>, vector<16x8xbf16>
    tpu.vector_store %arg3[%c0_22, %c0_23], %62 {strides = array<i32>} : memref<16x8xbf16, #tpu.memory_space<vmem>>, vector<16x8xbf16>,
    %cst_24 = arith.constant dense<0.000000e+00> : vector<8xf32>
    %64 = vector.multi_reduction <add>, %61, %cst_24 [0] : vector<16x8xf32> to vector<8xf32>
    %65 = vector.shape_cast %64 : vector<8xf32> to vector<1x8xf32>
    %66 = arith.mulf %61, %61 : vector<16x8xf32>
    %cst_25 = arith.constant dense<0.000000e+00> : vector<8xf32>
    %67 = vector.multi_reduction <add>, %66, %cst_25 [0] : vector<16x8xf32> to vector<8xf32>
    %68 = vector.shape_cast %67 : vector<8xf32> to vector<1x8xf32>
    %69 = tpu.concatenate %65, %68 in 0 : vector<1x8xf32>, vector<1x8xf32> -> vector<2x8xf32>
    %c0_i32_26 = arith.constant 0 : i32
    %70 = arith.cmpi eq, %arg0, %c0_i32_26 : i32
    %71 = arith.extui %70 : i1 to i32
    %c0_i32_27 = arith.constant 0 : i32
    %72 = arith.cmpi ne, %71, %c0_i32_27 : i32
    scf.if %72 {
      %c0_30 = arith.constant 0 : index
      %c0_31 = arith.constant 0 : index
      %76 = vector.load %arg4[%c0_30, %c0_31] : memref<2x8xf32, #tpu.memory_space<vmem>>, vector<2x8xf32>
      tpu.vector_store %arg4[%c0_30, %c0_31], %69 {strides = array<i32>} : memref<2x8xf32, #tpu.memory_space<vmem>>, vector<2x8xf32>,
    } else {
    }
    %c0_i32_28 = arith.constant 0 : i32
    %73 = arith.cmpi ne, %arg0, %c0_i32_28 : i32
    %74 = arith.extui %73 : i1 to i32
    %c0_i32_29 = arith.constant 0 : i32
    %75 = arith.cmpi ne, %74, %c0_i32_29 : i32
    scf.if %75 {
      %c0_30 = arith.constant 0 : index
      %c0_31 = arith.constant 0 : index
      %76 = vector.load %arg4[%c0_30, %c0_31] : memref<2x8xf32, #tpu.memory_space<vmem>>, vector<2x8xf32>
      %77 = arith.addf %76, %69 : vector<2x8xf32>
      %c0_32 = arith.constant 0 : index
      %c0_33 = arith.constant 0 : index
      %78 = vector.load %arg4[%c0_32, %c0_33] : memref<2x8xf32, #tpu.memory_space<vmem>>, vector<2x8xf32>
      tpu.vector_store %arg4[%c0_32, %c0_33], %77 {strides = array<i32>} : memref<2x8xf32, #tpu.memory_space<vmem>>, vector<2x8xf32>,
    } else {
    }
    return
  }
  func.func @transform_0(%arg0: i32) -> (i32, i32) {
    %c0_i32 = arith.constant 0 : i32
    %c0_i32_0 = arith.constant 0 : i32
    return %arg0, %c0_i32 : i32, i32
  }
  func.func @transform_1(%arg0: i32) -> (i32, i32, i32) {
    %c0_i32 = arith.constant 0 : i32
    %c0_i32_0 = arith.constant 0 : i32
    %c0_i32_1 = arith.constant 0 : i32
    %c0_i32_2 = arith.constant 0 : i32
    return %c0_i32, %c0_i32_0, %c0_i32_1 : i32, i32, i32
  }
  func.func @transform_2(%arg0: i32) -> (i32, i32) {
    %c0_i32 = arith.constant 0 : i32
    %c0_i32_0 = arith.constant 0 : i32
    return %arg0, %c0_i32 : i32, i32
  }
  func.func @transform_3(%arg0: i32) -> (i32, i32) {
    %c0_i32 = arith.constant 0 : i32
    %c0_i32_0 = arith.constant 0 : i32
    %c0_i32_1 = arith.constant 0 : i32
    return %c0_i32, %c0_i32_0 : i32, i32
  }
}

module attributes {stable_mosaic.version = 11 : i64} {
  func.func @_bn_act_kernel(%arg0: i32, %arg1: memref<16x8xbf16, #tpu.memory_space<vmem>>, %arg2: memref<1x8xf32, #tpu.memory_space<vmem>>, %arg3: memref<1x8xf32, #tpu.memory_space<vmem>>, %arg4: memref<1x8xf32, #tpu.memory_space<vmem>>, %arg5: memref<16x8xf32, #tpu.memory_space<vmem>>) attributes {dimension_semantics = [#tpu.dimension_semantics<parallel>], iteration_bounds = array<i64: 1>, scalar_prefetch = 0 : i64, scratch_operands = 0 : i64, tpu.core_type = #tpu.core_type<tc>, window_params = [{transform_indices = @transform_0, window_bounds = array<i64: 16, 8>}, {pipeline_mode = #tpu.pipeline_mode<synchronous>, transform_indices = @transform_1, window_bounds = array<i64: 1, 8>}, {pipeline_mode = #tpu.pipeline_mode<synchronous>, transform_indices = @transform_2, window_bounds = array<i64: 1, 8>}, {pipeline_mode = #tpu.pipeline_mode<synchronous>, transform_indices = @transform_3, window_bounds = array<i64: 1, 8>}, {transform_indices = @transform_4, window_bounds = array<i64: 16, 8>}]} {
    %c0 = arith.constant 0 : index
    %c0_0 = arith.constant 0 : index
    %0 = vector.load %arg1[%c0, %c0_0] : memref<16x8xbf16, #tpu.memory_space<vmem>>, vector<16x8xbf16>
    %1 = arith.extf %0 : vector<16x8xbf16> to vector<16x8xf32>
    %c0_1 = arith.constant 0 : index
    %c0_2 = arith.constant 0 : index
    %2 = vector.load %arg2[%c0_1, %c0_2] : memref<1x8xf32, #tpu.memory_space<vmem>>, vector<1x8xf32>
    %3 = vector.broadcast %2 : vector<1x8xf32> to vector<16x8xf32>
    %4 = arith.mulf %1, %3 : vector<16x8xf32>
    %c0_3 = arith.constant 0 : index
    %c0_4 = arith.constant 0 : index
    %5 = vector.load %arg3[%c0_3, %c0_4] : memref<1x8xf32, #tpu.memory_space<vmem>>, vector<1x8xf32>
    %6 = vector.broadcast %5 : vector<1x8xf32> to vector<16x8xf32>
    %7 = arith.addf %4, %6 : vector<16x8xf32>
    %cst = arith.constant 0.000000e+00 : f32
    %8 = vector.broadcast %cst : f32 to vector<16x8xf32>
    %9 = arith.cmpf oge, %7, %8 : vector<16x8xf32>
    %c0_5 = arith.constant 0 : index
    %c0_6 = arith.constant 0 : index
    %10 = vector.load %arg4[%c0_5, %c0_6] : memref<1x8xf32, #tpu.memory_space<vmem>>, vector<1x8xf32>
    %11 = vector.broadcast %10 : vector<1x8xf32> to vector<16x8xf32>
    %12 = arith.mulf %11, %7 : vector<16x8xf32>
    %13 = arith.select %9, %7, %12 : vector<16x8xi1>, vector<16x8xf32>
    %c0_7 = arith.constant 0 : index
    %c0_8 = arith.constant 0 : index
    %14 = vector.load %arg5[%c0_7, %c0_8] : memref<16x8xf32, #tpu.memory_space<vmem>>, vector<16x8xf32>
    tpu.vector_store %arg5[%c0_7, %c0_8], %13 {strides = array<i32>} : memref<16x8xf32, #tpu.memory_space<vmem>>, vector<16x8xf32>,
    return
  }
  func.func @transform_0(%arg0: i32) -> (i32, i32) {
    %c0_i32 = arith.constant 0 : i32
    %c0_i32_0 = arith.constant 0 : i32
    return %arg0, %c0_i32 : i32, i32
  }
  func.func @transform_1(%arg0: i32) -> (i32, i32) {
    %c0_i32 = arith.constant 0 : i32
    %c0_i32_0 = arith.constant 0 : i32
    %c0_i32_1 = arith.constant 0 : i32
    return %c0_i32, %c0_i32_0 : i32, i32
  }
  func.func @transform_2(%arg0: i32) -> (i32, i32) {
    %c0_i32 = arith.constant 0 : i32
    %c0_i32_0 = arith.constant 0 : i32
    %c0_i32_1 = arith.constant 0 : i32
    return %c0_i32, %c0_i32_0 : i32, i32
  }
  func.func @transform_3(%arg0: i32) -> (i32, i32) {
    %c0_i32 = arith.constant 0 : i32
    %c0_i32_0 = arith.constant 0 : i32
    %c0_i32_1 = arith.constant 0 : i32
    return %c0_i32, %c0_i32_0 : i32, i32
  }
  func.func @transform_4(%arg0: i32) -> (i32, i32) {
    %c0_i32 = arith.constant 0 : i32
    %c0_i32_0 = arith.constant 0 : i32
    return %arg0, %c0_i32 : i32, i32
  }
}

module attributes {stable_mosaic.version = 11 : i64} {
  func.func @_bn_act_conv2_stats_kernel(%arg0: i32, %arg1: memref<16x8xbf16, #tpu.memory_space<vmem>>, %arg2: memref<1x8xf32, #tpu.memory_space<vmem>>, %arg3: memref<1x8xf32, #tpu.memory_space<vmem>>, %arg4: memref<1x8xf32, #tpu.memory_space<vmem>>, %arg5: memref<3x8x8xbf16, #tpu.memory_space<vmem>>, %arg6: memref<16x8xbf16, #tpu.memory_space<vmem>>, %arg7: memref<2x8xf32, #tpu.memory_space<vmem>>) attributes {dimension_semantics = [#tpu.dimension_semantics<arbitrary>], iteration_bounds = array<i64: 1>, scalar_prefetch = 0 : i64, scratch_operands = 0 : i64, tpu.core_type = #tpu.core_type<tc>, window_params = [{transform_indices = @transform_0, window_bounds = array<i64: 16, 8>}, {pipeline_mode = #tpu.pipeline_mode<synchronous>, transform_indices = @transform_1, window_bounds = array<i64: 1, 8>}, {pipeline_mode = #tpu.pipeline_mode<synchronous>, transform_indices = @transform_2, window_bounds = array<i64: 1, 8>}, {pipeline_mode = #tpu.pipeline_mode<synchronous>, transform_indices = @transform_3, window_bounds = array<i64: 1, 8>}, {pipeline_mode = #tpu.pipeline_mode<synchronous>, transform_indices = @transform_4, window_bounds = array<i64: 3, 8, 8>}, {transform_indices = @transform_5, window_bounds = array<i64: 16, 8>}, {pipeline_mode = #tpu.pipeline_mode<synchronous>, transform_indices = @transform_6, window_bounds = array<i64: 2, 8>}]} {
    %c0 = arith.constant 0 : index
    %c0_0 = arith.constant 0 : index
    %0 = vector.load %arg1[%c0, %c0_0] : memref<16x8xbf16, #tpu.memory_space<vmem>>, vector<16x8xbf16>
    %1 = arith.extf %0 : vector<16x8xbf16> to vector<16x8xf32>
    %c0_1 = arith.constant 0 : index
    %c0_2 = arith.constant 0 : index
    %2 = vector.load %arg2[%c0_1, %c0_2] : memref<1x8xf32, #tpu.memory_space<vmem>>, vector<1x8xf32>
    %3 = vector.broadcast %2 : vector<1x8xf32> to vector<16x8xf32>
    %4 = arith.mulf %1, %3 : vector<16x8xf32>
    %c0_3 = arith.constant 0 : index
    %c0_4 = arith.constant 0 : index
    %5 = vector.load %arg3[%c0_3, %c0_4] : memref<1x8xf32, #tpu.memory_space<vmem>>, vector<1x8xf32>
    %6 = vector.broadcast %5 : vector<1x8xf32> to vector<16x8xf32>
    %7 = arith.addf %4, %6 : vector<16x8xf32>
    %cst = arith.constant 0.000000e+00 : f32
    %8 = vector.broadcast %cst : f32 to vector<16x8xf32>
    %9 = arith.cmpf oge, %7, %8 : vector<16x8xf32>
    %c0_5 = arith.constant 0 : index
    %c0_6 = arith.constant 0 : index
    %10 = vector.load %arg4[%c0_5, %c0_6] : memref<1x8xf32, #tpu.memory_space<vmem>>, vector<1x8xf32>
    %11 = vector.broadcast %10 : vector<1x8xf32> to vector<16x8xf32>
    %12 = arith.mulf %11, %7 : vector<16x8xf32>
    %13 = arith.select %9, %7, %12 : vector<16x8xi1>, vector<16x8xf32>
    %14 = tpu.iota {dimensions = array<i32: 0>} : vector<16x1xi32>
    %cst_7 = arith.constant 0.000000e+00 : f32
    %15 = vector.broadcast %cst_7 : f32 to vector<16x8xf32>
    %c8_i32 = arith.constant 8 : i32
    %c0_i32 = arith.constant 0 : i32
    %16 = arith.cmpi eq, %c8_i32, %c0_i32 : i32
    %c1_i32 = arith.constant 1 : i32
    %17 = arith.select %16, %c1_i32, %c8_i32 : i32
    %18 = vector.broadcast %17 : i32 to vector<16x1xi32>
    %19 = arith.remsi %14, %18 : vector<16x1xi32>
    %c0_i32_8 = arith.constant 0 : i32
    %20 = vector.broadcast %c0_i32_8 : i32 to vector<16x1xi32>
    %21 = arith.cmpi ne, %19, %20 : vector<16x1xi32>
    %c0_i32_9 = arith.constant 0 : i32
    %22 = vector.broadcast %c0_i32_9 : i32 to vector<16x1xi32>
    %23 = arith.cmpi slt, %19, %22 : vector<16x1xi32>
    %c0_i32_10 = arith.constant 0 : i32
    %24 = arith.cmpi slt, %17, %c0_i32_10 : i32
    %25 = vector.broadcast %24 : i1 to vector<16x1xi1>
    %26 = vector.broadcast %25 : vector<16x1xi1> to vector<16x1xi1>
    %27 = arith.xori %23, %26 : vector<16x1xi1>
    %28 = arith.andi %27, %21 : vector<16x1xi1>
    %29 = vector.broadcast %17 : i32 to vector<16x1xi32>
    %30 = arith.addi %19, %29 : vector<16x1xi32>
    %31 = arith.select %28, %30, %19 : vector<16x1xi1>, vector<16x1xi32>
    %c0_i32_11 = arith.constant 0 : i32
    %32 = vector.broadcast %c0_i32_11 : i32 to vector<16x1xi32>
    %33 = arith.cmpi eq, %31, %32 : vector<16x1xi32>
    %c1_i32_12 = arith.constant 1 : i32
    %34 = tpu.dynamic_rotate %13 by %c1_i32_12 dim 0 : vector<16x8xf32>, i32 -> vector<16x8xf32>
    %35 = vector.shape_cast %33 : vector<16x1xi1> to vector<16x1xi1>
    %36 = vector.broadcast %35 : vector<16x1xi1> to vector<16x8xi1>
    %37 = arith.select %36, %15, %34 : vector<16x8xi1>, vector<16x8xf32>
    %c8_i32_13 = arith.constant 8 : i32
    %c0_i32_14 = arith.constant 0 : i32
    %38 = arith.cmpi eq, %c8_i32_13, %c0_i32_14 : i32
    %c1_i32_15 = arith.constant 1 : i32
    %39 = arith.select %38, %c1_i32_15, %c8_i32_13 : i32
    %40 = vector.broadcast %39 : i32 to vector<16x1xi32>
    %41 = arith.remsi %14, %40 : vector<16x1xi32>
    %c0_i32_16 = arith.constant 0 : i32
    %42 = vector.broadcast %c0_i32_16 : i32 to vector<16x1xi32>
    %43 = arith.cmpi ne, %41, %42 : vector<16x1xi32>
    %c0_i32_17 = arith.constant 0 : i32
    %44 = vector.broadcast %c0_i32_17 : i32 to vector<16x1xi32>
    %45 = arith.cmpi slt, %41, %44 : vector<16x1xi32>
    %c0_i32_18 = arith.constant 0 : i32
    %46 = arith.cmpi slt, %39, %c0_i32_18 : i32
    %47 = vector.broadcast %46 : i1 to vector<16x1xi1>
    %48 = vector.broadcast %47 : vector<16x1xi1> to vector<16x1xi1>
    %49 = arith.xori %45, %48 : vector<16x1xi1>
    %50 = arith.andi %49, %43 : vector<16x1xi1>
    %51 = vector.broadcast %39 : i32 to vector<16x1xi32>
    %52 = arith.addi %41, %51 : vector<16x1xi32>
    %53 = arith.select %50, %52, %41 : vector<16x1xi1>, vector<16x1xi32>
    %c7_i32 = arith.constant 7 : i32
    %54 = vector.broadcast %c7_i32 : i32 to vector<16x1xi32>
    %55 = arith.cmpi eq, %53, %54 : vector<16x1xi32>
    %c15_i32 = arith.constant 15 : i32
    %56 = tpu.dynamic_rotate %13 by %c15_i32 dim 0 : vector<16x8xf32>, i32 -> vector<16x8xf32>
    %57 = vector.shape_cast %55 : vector<16x1xi1> to vector<16x1xi1>
    %58 = vector.broadcast %57 : vector<16x1xi1> to vector<16x8xi1>
    %59 = arith.select %58, %15, %56 : vector<16x8xi1>, vector<16x8xf32>
    %60 = arith.truncf %37 : vector<16x8xf32> to vector<16x8xbf16>
    %c0_19 = arith.constant 0 : index
    %c0_20 = arith.constant 0 : index
    %c0_21 = arith.constant 0 : index
    %61 = vector.load %arg5[%c0_19, %c0_20, %c0_21] : memref<3x8x8xbf16, #tpu.memory_space<vmem>>, vector<1x8x8xbf16>
    %62 = vector.shape_cast %61 : vector<1x8x8xbf16> to vector<8x8xbf16>
    %cst_22 = arith.constant dense<0.000000e+00> : vector<16x8xf32>
    %63 = tpu.matmul %60, %62, %cst_22 {dimension_numbers = #tpu.dot_dimension_numbers<[1], [0], [0], [1], [0, 0, 1, 1], [], []>} : vector<16x8xbf16>, vector<8x8xbf16>, vector<16x8xf32> -> vector<16x8xf32>
    %64 = arith.truncf %13 : vector<16x8xf32> to vector<16x8xbf16>
    %c1 = arith.constant 1 : index
    %c0_23 = arith.constant 0 : index
    %c0_24 = arith.constant 0 : index
    %65 = vector.load %arg5[%c1, %c0_23, %c0_24] : memref<3x8x8xbf16, #tpu.memory_space<vmem>>, vector<1x8x8xbf16>
    %66 = vector.shape_cast %65 : vector<1x8x8xbf16> to vector<8x8xbf16>
    %cst_25 = arith.constant dense<0.000000e+00> : vector<16x8xf32>
    %67 = tpu.matmul %64, %66, %cst_25 {dimension_numbers = #tpu.dot_dimension_numbers<[1], [0], [0], [1], [0, 0, 1, 1], [], []>} : vector<16x8xbf16>, vector<8x8xbf16>, vector<16x8xf32> -> vector<16x8xf32>
    %68 = arith.addf %63, %67 : vector<16x8xf32>
    %69 = arith.truncf %59 : vector<16x8xf32> to vector<16x8xbf16>
    %c2 = arith.constant 2 : index
    %c0_26 = arith.constant 0 : index
    %c0_27 = arith.constant 0 : index
    %70 = vector.load %arg5[%c2, %c0_26, %c0_27] : memref<3x8x8xbf16, #tpu.memory_space<vmem>>, vector<1x8x8xbf16>
    %71 = vector.shape_cast %70 : vector<1x8x8xbf16> to vector<8x8xbf16>
    %cst_28 = arith.constant dense<0.000000e+00> : vector<16x8xf32>
    %72 = tpu.matmul %69, %71, %cst_28 {dimension_numbers = #tpu.dot_dimension_numbers<[1], [0], [0], [1], [0, 0, 1, 1], [], []>} : vector<16x8xbf16>, vector<8x8xbf16>, vector<16x8xf32> -> vector<16x8xf32>
    %73 = arith.addf %68, %72 : vector<16x8xf32>
    %74 = arith.truncf %73 : vector<16x8xf32> to vector<16x8xbf16>
    %c0_29 = arith.constant 0 : index
    %c0_30 = arith.constant 0 : index
    %75 = vector.load %arg6[%c0_29, %c0_30] : memref<16x8xbf16, #tpu.memory_space<vmem>>, vector<16x8xbf16>
    tpu.vector_store %arg6[%c0_29, %c0_30], %74 {strides = array<i32>} : memref<16x8xbf16, #tpu.memory_space<vmem>>, vector<16x8xbf16>,
    %76 = tpu.iota {dimensions = array<i32: 0>} : vector<16x1xi32>
    %c16_i32 = arith.constant 16 : i32
    %77 = arith.muli %arg0, %c16_i32 : i32
    %78 = vector.broadcast %77 : i32 to vector<16x1xi32>
    %79 = arith.addi %76, %78 : vector<16x1xi32>
    %c16_i32_31 = arith.constant 16 : i32
    %80 = vector.broadcast %c16_i32_31 : i32 to vector<16x1xi32>
    %81 = arith.cmpi slt, %79, %80 : vector<16x1xi32>
    %cst_32 = arith.constant 0.000000e+00 : f32
    %82 = vector.shape_cast %81 : vector<16x1xi1> to vector<16x1xi1>
    %83 = vector.broadcast %82 : vector<16x1xi1> to vector<16x8xi1>
    %84 = vector.broadcast %cst_32 : f32 to vector<16x8xf32>
    %85 = arith.select %83, %73, %84 : vector<16x8xi1>, vector<16x8xf32>
    %cst_33 = arith.constant dense<0.000000e+00> : vector<8xf32>
    %86 = vector.multi_reduction <add>, %85, %cst_33 [0] : vector<16x8xf32> to vector<8xf32>
    %87 = vector.shape_cast %86 : vector<8xf32> to vector<1x8xf32>
    %88 = arith.mulf %85, %85 : vector<16x8xf32>
    %cst_34 = arith.constant dense<0.000000e+00> : vector<8xf32>
    %89 = vector.multi_reduction <add>, %88, %cst_34 [0] : vector<16x8xf32> to vector<8xf32>
    %90 = vector.shape_cast %89 : vector<8xf32> to vector<1x8xf32>
    %91 = tpu.concatenate %87, %90 in 0 : vector<1x8xf32>, vector<1x8xf32> -> vector<2x8xf32>
    %c0_i32_35 = arith.constant 0 : i32
    %92 = arith.cmpi eq, %arg0, %c0_i32_35 : i32
    %93 = arith.extui %92 : i1 to i32
    %c0_i32_36 = arith.constant 0 : i32
    %94 = arith.cmpi ne, %93, %c0_i32_36 : i32
    scf.if %94 {
      %c0_39 = arith.constant 0 : index
      %c0_40 = arith.constant 0 : index
      %98 = vector.load %arg7[%c0_39, %c0_40] : memref<2x8xf32, #tpu.memory_space<vmem>>, vector<2x8xf32>
      tpu.vector_store %arg7[%c0_39, %c0_40], %91 {strides = array<i32>} : memref<2x8xf32, #tpu.memory_space<vmem>>, vector<2x8xf32>,
    } else {
    }
    %c0_i32_37 = arith.constant 0 : i32
    %95 = arith.cmpi ne, %arg0, %c0_i32_37 : i32
    %96 = arith.extui %95 : i1 to i32
    %c0_i32_38 = arith.constant 0 : i32
    %97 = arith.cmpi ne, %96, %c0_i32_38 : i32
    scf.if %97 {
      %c0_39 = arith.constant 0 : index
      %c0_40 = arith.constant 0 : index
      %98 = vector.load %arg7[%c0_39, %c0_40] : memref<2x8xf32, #tpu.memory_space<vmem>>, vector<2x8xf32>
      %99 = arith.addf %98, %91 : vector<2x8xf32>
      %c0_41 = arith.constant 0 : index
      %c0_42 = arith.constant 0 : index
      %100 = vector.load %arg7[%c0_41, %c0_42] : memref<2x8xf32, #tpu.memory_space<vmem>>, vector<2x8xf32>
      tpu.vector_store %arg7[%c0_41, %c0_42], %99 {strides = array<i32>} : memref<2x8xf32, #tpu.memory_space<vmem>>, vector<2x8xf32>,
    } else {
    }
    return
  }
  func.func @transform_0(%arg0: i32) -> (i32, i32) {
    %c0_i32 = arith.constant 0 : i32
    %c0_i32_0 = arith.constant 0 : i32
    return %arg0, %c0_i32 : i32, i32
  }
  func.func @transform_1(%arg0: i32) -> (i32, i32) {
    %c0_i32 = arith.constant 0 : i32
    %c0_i32_0 = arith.constant 0 : i32
    %c0_i32_1 = arith.constant 0 : i32
    return %c0_i32, %c0_i32_0 : i32, i32
  }
  func.func @transform_2(%arg0: i32) -> (i32, i32) {
    %c0_i32 = arith.constant 0 : i32
    %c0_i32_0 = arith.constant 0 : i32
    %c0_i32_1 = arith.constant 0 : i32
    return %c0_i32, %c0_i32_0 : i32, i32
  }
  func.func @transform_3(%arg0: i32) -> (i32, i32) {
    %c0_i32 = arith.constant 0 : i32
    %c0_i32_0 = arith.constant 0 : i32
    %c0_i32_1 = arith.constant 0 : i32
    return %c0_i32, %c0_i32_0 : i32, i32
  }
  func.func @transform_4(%arg0: i32) -> (i32, i32, i32) {
    %c0_i32 = arith.constant 0 : i32
    %c0_i32_0 = arith.constant 0 : i32
    %c0_i32_1 = arith.constant 0 : i32
    %c0_i32_2 = arith.constant 0 : i32
    return %c0_i32, %c0_i32_0, %c0_i32_1 : i32, i32, i32
  }
  func.func @transform_5(%arg0: i32) -> (i32, i32) {
    %c0_i32 = arith.constant 0 : i32
    %c0_i32_0 = arith.constant 0 : i32
    return %arg0, %c0_i32 : i32, i32
  }
  func.func @transform_6(%arg0: i32) -> (i32, i32) {
    %c0_i32 = arith.constant 0 : i32
    %c0_i32_0 = arith.constant 0 : i32
    %c0_i32_1 = arith.constant 0 : i32
    return %c0_i32, %c0_i32_0 : i32, i32
  }
}

</mosaic_0001>

<bundles_post_ra>
// kernel: down_forward.3
= control target key start
LH: loop header
LB: loop body
LE: loop exit
PB: predicated region body
PF: predicated region fallthrough
CT: control target
= control target key end

     0   :  { %vm84_vm0 = vcmask 1041408   ;;  %v322_v0 = vmov 0.0   ;;  %vm323_vm1 = vmmov 0   ;;  %v18_v4 = vlaneseq  ;;  %s376_s1 = inlined_call_operand.vmem [shape: bf16[3,4,8], index: 1, kind: input, shape index: {}]   ;;  %s377_s0 = inlined_call_operand.vmem [shape: bf16[16,4], index: 0, kind: input, shape index: {}]   ;;  %s378_s2 = inlined_call_operand.vmem [shape: bf16[16,8], index: 2, kind: output, shape index: {0}]   ;;  %s379_s3 = inlined_call_operand.vmem [shape: f32[2,8], index: 3, kind: output, shape index: {1}]  }
   0x1   :  { %300 = vmatprep.subr.bf16.mxu0 %v322_v0  ;;  %v284_v1 = vld [vmem:[%s376_s1 + $0x2] sm:$0x3]  ;;  %302 = vmatprep.mubr.msk.bf16.mxu0 %vm323_vm1, %v322_v0  ;;  %v288_v3 = vld [vmem:[%s376_s1 + $0x4] sm:$0x3]  ;;  %v72_v8 = vld [vmem:[%s376_s1] sm:$0x3] }
   0x2   :  { %v14_v2 = vld [vmem:[%s377_s0] sm:$0xff]   ;;  %v86_v5 = vsel %vm84_vm0, %v284_v1, 0  ;;  %306 = vmatprep.subr.bf16.mxu1 %v322_v0  ;;  %308 = vmatprep.mubr.msk.bf16.mxu1 %vm323_vm1, %v322_v0  ;;  %vm80_vm2 = vcmask 31744   ;;  %v183_v9 = vsel %vm84_vm0, %v288_v3, 0  ;;  %v133_v10 = vsel %vm84_vm0, %v72_v8, 0 }
   0x3   :  { %v16_v6 = vunpack.c.l.bf16 %v14_v2  ;;  %v17_v7 = vunpack.c.h.bf16 %v14_v2  ;;  %301 = vmatpush3.bf16.msra.mxu0 %v86_v5  ;;  %v19_v11 = vshrl.u32 %v18_v4, 7  ;;  %307 = vmatpush3.bf16.msra.mxu1 %v133_v10  ;;  %vm236_vm9 = vcmask 60416  }
   0x4   :  { %312 = vmatprep.subr.bf16.mxu0 %v322_v0  ;;  %vm239_vm10 = vcmask 64512   ;;  %vm260_vm11 = vcmask 1040384   ;;  %vm266_vm12 = vcmask 58368  }
   0x5   :  { %v47_v12 = vrot.slane %v16_v6, 7  ;;  %v48_v13 = vrot.slane %v17_v7, 7  ;;  %v60_v14 = vrot.slane %v16_v6, 1  ;;  %v61_v15 = vrot.slane %v17_v7, 1 }
   0x6   :  { %v20_v16 = vadd.s32 8, %v19_v11  ;;  %v25_v17 = vand.u32 7, %v19_v11  ;;  %vm49_vm3 = vcmp.lt.s32.totalorder %v19_v11, 1  ;;  %vm62_vm4 = vcmp.lt.s32.totalorder %v19_v11, 7  ;;  %303 = vmatmul.mubr.msk.bf16.vlgmr.msra.gmra.mxu0 %vm80_vm2, %v14_v2 }
   0x7   :  { %v50_v18 = vsel %vm49_vm3, %v47_v12, %v48_v13  ;;  %v51_v19 = vsel %vm49_vm3, %v48_v13, %v47_v12  ;;  %v63_v20 = vsel %vm62_vm4, %v60_v14, %v61_v15  ;;  %313 = vmatpush3.bf16.msra.mxu0 %v183_v9  ;;  %314 = vmatprep.mubr.msk.bf16.mxu0 %vm323_vm1, %v322_v0 }
   0x8   :  { %v32_v21 = vand.u32 7, %v20_v16  ;;  %vm45_vm5 = vcmp.eq.s32.totalorder %v25_v17, 0  ;;  %vm58_vm6 = vcmp.eq.s32.totalorder %v25_v17, 7  ;;  %v64_v22 = vsel %vm62_vm4, %v61_v15, %v60_v14 }
   0x9   :  { %v56_v23 = vsel %vm45_vm5, 0.0, %v51_v19  ;;  %v69_v24 = vsel %vm58_vm6, 0.0, %v63_v20 }
   0xa   :  { %vm46_vm7 = vcmp.eq.s32.totalorder %v32_v21, 0  ;;  %vm59_vm8 = vcmp.eq.s32.totalorder %v32_v21, 7 }
   0xb   :  { %v57_v25 = vsel %vm46_vm7, 0.0, %v50_v18  ;;  %v70_v26 = vsel %vm59_vm8, 0.0, %v64_v22 }
   0xc   :  { %v71_v27 = vpack.c.bf16 %v57_v25, %v56_v23  ;;  %v176_v28 = vpack.c.bf16 %v70_v26, %v69_v24 }
   0xe   :  { %309 = vmatmul.mubr.msk.bf16.vlgmr.msra.gmra.mxu1 %vm80_vm2, %v71_v27  ;;  %315 = vmatmul.mubr.msk.bf16.vlgmr.msra.gmra.mxu0 %vm80_vm2, %v176_v28 }
  0xc6   :  { %v122_v29 = vpop.f32.mrf.mxu0 }
  0xc8   :  { %v304_v30 = vpop.f32.mrf.mxu0 }
  0xca   :  { %v125_v31 = vpop.f32.mrf.mxu0 }
  0xcc   :  { %v305_v32 = vpop.f32.mrf.mxu0 }
  0xce   :  { %v169_v33 = vpop.f32.mrf.mxu1  ;;  %v219_v35 = vpop.f32.mrf.mxu0 }
  0xcf   :  { %v170_v34 = vadd.f32 %v169_v33, %v122_v29 }
  0xd0   :  { %v310_v36 = vpop.f32.mrf.mxu1  ;;  %v316_v38 = vpop.f32.mrf.mxu0 }
  0xd1   :  { %v226_v37 = vadd.f32 %v219_v35, %v170_v34 }
  0xd2   :  { %v172_v39 = vpop.f32.mrf.mxu1  ;;  %v222_v42 = vpop.f32.mrf.mxu0 }
  0xd3   :  { %v292_v40 = vpack.c.bf16 %v226_v37, %v226_v37  ;;  %v173_v41 = vadd.f32 %v172_v39, %v125_v31  ;;  %v249_v44 = vmul.f32 %v226_v37, %v226_v37  ;;  %v240_v47 = vsel %vm239_vm10, %v226_v37, 0.0 }
  0xd4   :  { %v311_v43 = vpop.f32.mrf.mxu1  ;;  %v317_v46 = vpop.f32.mrf.mxu0 }
  0xd5   :  { %237 = vst.msk [vmem:[%s378_s2] sm:$0xf] %vm236_vm9, %v292_v40  ;;  %v227_v45 = vadd.f32 %v222_v42, %v173_v41  ;;  %v251_v52 = vsel %vm239_vm10, %v249_v44, 0.0 }
  0xd7   :  { %v293_v48 = vpack.c.bf16 %v227_v45, %v227_v45  ;;  %v241_v49 = vsel %vm239_vm10, %v227_v45, 0.0  ;;  %v250_v50 = vmul.f32 %v227_v45, %v227_v45 }
  0xd8   :  { %v242_v51 = vadd.f32 %v241_v49, %v240_v47 }
  0xd9   :  { %238 = vst.msk [vmem:[%s378_s2 + $0x4] sm:$0xf] %vm236_vm9, %v293_v48  ;;  %v252_v53 = vsel %vm239_vm10, %v250_v50, 0.0 }
  0xda   :  { %v243_v54 = vrot.slane %v242_v51, 4  ;;  %v253_v55 = vadd.f32 %v252_v53, %v251_v52 }
  0xdc   :  { %v244_v56 = vadd.f32 %v243_v54, %v242_v51  ;;  %v254_v57 = vrot.slane %v253_v55, 4 }
  0xde   :  { %v245_v58 = vrot.slane %v244_v56, 2  ;;  %v255_v59 = vadd.f32 %v254_v57, %v253_v55 }
  0xe0   :  { %v246_v60 = vadd.f32 %v245_v58, %v244_v56  ;;  %v256_v61 = vrot.slane %v255_v59, 2 }
  0xe2   :  { %v247_v62 = vrot.slane %v246_v60, 1  ;;  %v257_v63 = vadd.f32 %v256_v61, %v255_v59 }
  0xe4   :  { %v258_v0 = vrot.slane %v257_v63, 1  ;;  %v248_v1 = vadd.f32 %v247_v62, %v246_v60 }
  0xe6   :  { %v259_v2 = vadd.f32 %v258_v0, %v257_v63 }
  0xe8   :  { %v261_v3 = vsel %vm260_vm11, %v248_v1, %v259_v2 }
  0xe9   :  { %267 = vst.msk [vmem:[%s379_s3] sm:$0x3] %vm266_vm12, %v261_v3 }

// kernel: down_forward.5
= control target key start
LH: loop header
LB: loop body
LE: loop exit
PB: predicated region body
PF: predicated region fallthrough
CT: control target
= control target key end

     0   :  { %vm52_vm0 = vcmask 64512   ;;  %s109_s0 = inlined_call_operand.vmem [shape: bf16[16,8], index: 0, kind: input, shape index: {}]   ;;  %s110_s1 = inlined_call_operand.vmem [shape: f32[1,8], index: 1, kind: input, shape index: {}]   ;;  %s111_s2 = inlined_call_operand.vmem [shape: f32[1,8], index: 2, kind: input, shape index: {}]   ;;  %s112_s3 = inlined_call_operand.vmem [shape: f32[1,8], index: 3, kind: input, shape index: {}]   ;;  %s113_s4 = inlined_call_operand.vmem [shape: f32[16,8], index: 4, kind: output, shape index: {}]  }
   0x1   :  { %v63_v0 = vld [vmem:[%s109_s0] sm:$0xff]  }
   0x2   :  { %v59_v1 = vld [vmem:[%s110_s1] ss:$0 sm:$0xff]  ;;  %v64_v2 = vunpack.c.l.bf16 %v63_v0  ;;  %v65_v3 = vunpack.c.h.bf16 %v63_v0 }
   0x3   :  { %v60_v4 = vld [vmem:[%s111_s2] ss:$0 sm:$0xff] }
   0x4   :  { %v28_v5 = vmul.f32 %v64_v2, %v59_v1  ;;  %v29_v6 = vmul.f32 %v65_v3, %v59_v1  ;;  %v61_v7 = vld [vmem:[%s112_s3] ss:$0 sm:$0xff] }
   0x6   :  { %v37_v8 = vadd.f32 %v60_v4, %v28_v5  ;;  %v38_v9 = vadd.f32 %v60_v4, %v29_v6 }
   0x8   :  { %vm39_vm1 = vcmp.ge.f32.partialorder %v37_v8, 0.0  ;;  %v48_v10 = vmul.f32 %v61_v7, %v37_v8  ;;  %vm40_vm2 = vcmp.ge.f32.partialorder %v38_v9, 0.0  ;;  %v49_v11 = vmul.f32 %v61_v7, %v38_v9 }
   0xa   :  { %v50_v12 = vsel %vm39_vm1, %v37_v8, %v48_v10  ;;  %v51_v13 = vsel %vm40_vm2, %v38_v9, %v49_v11 }
   0xb   :  { %53 = vst.msk [vmem:[%s113_s4] sm:$0xff] %vm52_vm0, %v50_v12  ;;  %54 = vst.msk [vmem:[%s113_s4 + $0x8] sm:$0xff] %vm52_vm0, %v51_v13 }

// kernel: down_forward.4
= control target key start
LH: loop header
LB: loop body
LE: loop exit
PB: predicated region body
PF: predicated region fallthrough
CT: control target
= control target key end

     0   :  { %vm120_vm0 = vcmask 1043456   ;;  %v373_v0 = vmov 0.0   ;;  %vm374_vm1 = vmmov 0   ;;  %v58_v4 = vlaneseq  ;;  %s467_s4 = inlined_call_operand.vmem [shape: bf16[3,8,8], index: 4, kind: input, shape index: {}]   ;;  %s468_s0 = inlined_call_operand.vmem [shape: bf16[16,8], index: 0, kind: input, shape index: {}]   ;;  %s469_s1 = inlined_call_operand.vmem [shape: f32[1,8], index: 1, kind: input, shape index: {}]   ;;  %s470_s2 = inlined_call_operand.vmem [shape: f32[1,8], index: 2, kind: input, shape index: {}]   ;;  %s471_s3 = inlined_call_operand.vmem [shape: f32[1,8], index: 3, kind: input, shape index: {}]   ;;  %s472_s5 = inlined_call_operand.vmem [shape: bf16[16,8], index: 5, kind: output, shape index: {0}]   ;;  %s473_s6 = inlined_call_operand.vmem [shape: f32[2,8], index: 6, kind: output, shape index: {1}]  }
   0x1   :  { %353 = vmatprep.subr.bf16.mxu0 %v373_v0  ;;  %v334_v1 = vld [vmem:[%s467_s4 + $0x4] sm:$0xf]  ;;  %355 = vmatprep.mubr.msk.bf16.mxu0 %vm374_vm1, %v373_v0  ;;  %v331_v3 = vld [vmem:[%s469_s1] ss:$0 sm:$0xff]  ;;  %vm116_vm4 = vcmask 64512   ;;  %vm272_vm11 = vcmask 60416  }
   0x2   :  { %v344_v2 = vld [vmem:[%s468_s0] sm:$0xff]   ;;  %v122_v5 = vsel %vm120_vm0, %v334_v1, 0  ;;  %359 = vmatprep.subr.bf16.mxu1 %v373_v0  ;;  %361 = vmatprep.mubr.msk.bf16.mxu1 %vm374_vm1, %v373_v0  ;;  %v59_v10 = vshrl.u32 %v58_v4, 7  ;;  %v337_v22 = vld [vmem:[%s467_s4 + $0x8] sm:$0xf]  ;;  %vm307_vm12 = vcmask 1040384  }
   0x3   :  { %v345_v6 = vunpack.c.l.bf16 %v344_v2  ;;  %v346_v7 = vunpack.c.h.bf16 %v344_v2  ;;  %354 = vmatpush3.bf16.msra.mxu0 %v122_v5  ;;  %v332_v8 = vld [vmem:[%s470_s2] ss:$0 sm:$0xff]  ;;  %v219_v32 = vsel %vm120_vm0, %v337_v22, 0  ;;  %vm313_vm13 = vcmask 58368  }
   0x4   :  { %v112_v9 = vld [vmem:[%s467_s4] sm:$0xf]  ;;  %365 = vmatprep.subr.bf16.mxu0 %v373_v0  ;;  %v60_v15 = vadd.s32 8, %v59_v10  ;;  %v65_v18 = vand.u32 7, %v59_v10  ;;  %vm89_vm5 = vcmp.lt.s32.totalorder %v59_v10, 1  ;;  %vm102_vm6 = vcmp.lt.s32.totalorder %v59_v10, 7 }
   0x5   :  { %v34_v11 = vmul.f32 %v345_v6, %v331_v3  ;;  %v35_v12 = vmul.f32 %v346_v7, %v331_v3  ;;  %v169_v13 = vsel %vm120_vm0, %v112_v9, 0  ;;  %v333_v14 = vld [vmem:[%s471_s3] ss:$0 sm:$0xff] }
   0x6   :  { %360 = vmatpush3.bf16.msra.mxu1 %v169_v13  ;;  %v72_v19 = vand.u32 7, %v60_v15  ;;  %vm435_vm7 = vcmp.eq.s32.totalorder %v65_v18, 0  ;;  %vm98_vm9 = vcmp.eq.s32.totalorder %v65_v18, 7 }
   0x7   :  { %v43_v16 = vadd.f32 %v332_v8, %v34_v11  ;;  %v44_v17 = vadd.f32 %v332_v8, %v35_v12 }
   0x8   :  { %vm439_vm8 = vcmp.eq.s32.totalorder %v72_v19, 0  ;;  %vm99_vm10 = vcmp.eq.s32.totalorder %v72_v19, 7 }
   0x9   :  { %vm45_vm2 = vcmp.ge.f32.partialorder %v43_v16, 0.0  ;;  %vm46_vm3 = vcmp.ge.f32.partialorder %v44_v17, 0.0  ;;  %v54_v20 = vmul.f32 %v333_v14, %v43_v16  ;;  %v55_v21 = vmul.f32 %v333_v14, %v44_v17 }
   0xb   :  { %v56_v23 = vsel %vm45_vm2, %v43_v16, %v54_v20  ;;  %v57_v24 = vsel %vm46_vm3, %v44_v17, %v55_v21 }
   0xc   :  { %v87_v27 = vrot.slane %v56_v23, 7  ;;  %v88_v28 = vrot.slane %v57_v24, 7  ;;  %v100_v29 = vrot.slane %v56_v23, 1  ;;  %v101_v30 = vrot.slane %v57_v24, 1 }
   0xd   :  { %v113_v31 = vpack.c.bf16 %v57_v24, %v56_v23 }
   0xe   :  { %v90_v33 = vsel %vm89_vm5, %v87_v27, %v88_v28  ;;  %v91_v34 = vsel %vm89_vm5, %v88_v28, %v87_v27  ;;  %v103_v35 = vsel %vm102_vm6, %v100_v29, %v101_v30  ;;  %v104_v36 = vsel %vm102_vm6, %v101_v30, %v100_v29 }
   0xf   :  { %356 = vmatmul.mubr.msk.bf16.vlgmr.msra.gmra.mxu0 %vm116_vm4, %v113_v31  ;;  %v96_v37 = vsel %vm435_vm7, 0.0, %v91_v34  ;;  %v97_v38 = vsel %vm439_vm8, 0.0, %v90_v33  ;;  %v109_v40 = vsel %vm98_vm9, 0.0, %v103_v35  ;;  %v110_v41 = vsel %vm99_vm10, 0.0, %v104_v36 }
  0x10   :  { %366 = vmatpush3.bf16.msra.mxu0 %v219_v32  ;;  %v111_v39 = vpack.c.bf16 %v97_v38, %v96_v37  ;;  %367 = vmatprep.mubr.msk.bf16.mxu0 %vm374_vm1, %v373_v0  ;;  %v212_v42 = vpack.c.bf16 %v110_v41, %v109_v40 }
  0x12   :  { %362 = vmatmul.mubr.msk.bf16.vlgmr.msra.gmra.mxu1 %vm116_vm4, %v111_v39 }
  0x17   :  { %368 = vmatmul.mubr.msk.bf16.vlgmr.msra.gmra.mxu0 %vm116_vm4, %v212_v42 }
  0xcf   :  { %v158_v43 = vpop.f32.mrf.mxu0 }
  0xd1   :  { %v357_v44 = vpop.f32.mrf.mxu0 }
  0xd2   :  { %v205_v45 = vpop.f32.mrf.mxu1 }
  0xd3   :  { %v161_v46 = vpop.f32.mrf.mxu0  ;;  %v206_v49 = vadd.f32 %v205_v45, %v158_v43 }
  0xd4   :  { %v363_v47 = vpop.f32.mrf.mxu1 }
  0xd5   :  { %v358_v48 = vpop.f32.mrf.mxu0 }
  0xd6   :  { %v208_v50 = vpop.f32.mrf.mxu1 }
  0xd7   :  { %v255_v51 = vpop.f32.mrf.mxu0  ;;  %v209_v55 = vadd.f32 %v208_v50, %v161_v46 }
  0xd8   :  { %v262_v52 = vadd.f32 %v255_v51, %v206_v49  ;;  %v364_v53 = vpop.f32.mrf.mxu1 }
  0xd9   :  { %v369_v54 = vpop.f32.mrf.mxu0 }
  0xda   :  { %v341_v56 = vpack.c.bf16 %v262_v52, %v262_v52  ;;  %v296_v58 = vmul.f32 %v262_v52, %v262_v52  ;;  %v287_v61 = vsel %vm116_vm4, %v262_v52, 0.0 }
  0xdb   :  { %v258_v57 = vpop.f32.mrf.mxu0 }
  0xdc   :  { %273 = vst.msk [vmem:[%s472_s5] sm:$0xf] %vm272_vm11, %v341_v56  ;;  %v263_v59 = vadd.f32 %v258_v57, %v209_v55  ;;  %v298_v2 = vsel %vm116_vm4, %v296_v58, 0.0 }
  0xdd   :  { %v370_v60 = vpop.f32.mrf.mxu0 }
  0xde   :  { %v342_v62 = vpack.c.bf16 %v263_v59, %v263_v59  ;;  %v288_v63 = vsel %vm116_vm4, %v263_v59, 0.0  ;;  %v297_v0 = vmul.f32 %v263_v59, %v263_v59 }
  0xdf   :  { %v289_v1 = vadd.f32 %v288_v63, %v287_v61 }
  0xe0   :  { %274 = vst.msk [vmem:[%s472_s5 + $0x4] sm:$0xf] %vm272_vm11, %v342_v62  ;;  %v299_v3 = vsel %vm116_vm4, %v297_v0, 0.0 }
  0xe1   :  { %v290_v4 = vrot.slane %v289_v1, 4  ;;  %v300_v5 = vadd.f32 %v299_v3, %v298_v2 }
  0xe3   :  { %v291_v6 = vadd.f32 %v290_v4, %v289_v1  ;;  %v301_v7 = vrot.slane %v300_v5, 4 }
  0xe5   :  { %v292_v8 = vrot.slane %v291_v6, 2  ;;  %v302_v9 = vadd.f32 %v301_v7, %v300_v5 }
  0xe7   :  { %v293_v10 = vadd.f32 %v292_v8, %v291_v6  ;;  %v303_v11 = vrot.slane %v302_v9, 2 }
  0xe9   :  { %v294_v12 = vrot.slane %v293_v10, 1  ;;  %v304_v13 = vadd.f32 %v303_v11, %v302_v9 }
  0xeb   :  { %v305_v14 = vrot.slane %v304_v13, 1  ;;  %v295_v15 = vadd.f32 %v294_v12, %v293_v10 }
  0xed   :  { %v306_v16 = vadd.f32 %v305_v14, %v304_v13 }
  0xef   :  { %v308_v17 = vsel %vm307_vm12, %v295_v15, %v306_v16 }
  0xf0   :  { %314 = vst.msk [vmem:[%s473_s6] sm:$0x3] %vm313_vm13, %v308_v17 }

</bundles_post_ra>
